<compile_context>
chip_gen: v7x
topology: tpu7x:2x2x1
jax: 0.10.0
libtpu: 0.0.40
codegen_flags: <defaults>
</compile_context>

<pallas_src>
import jax
import jax.numpy as jnp
from jax.experimental import pallas as pl
from jax.experimental.pallas import tpu as pltpu

_LANE = 128      # vreg lane width (same on v5e / v6e / v7x)
_SUBLANE = 8     # f32 sublane count


def _round_up(x, m):
    return (x + m - 1) // m * m


def prepare_time_embedder_params(weight, bias, *, param_dtype=None,
                                 lane_multiple=_LANE):
    """One-time parameter prep (do this at init, NOT per forward call).

    weight: (Cout, Cin)  -- PyTorch nn.Linear layout
    bias:   (Cout,)
    Returns (w_prepared (Cin, cout_p), b_prepared (1, cout_p) f32, Cout).

    cout_p is Cout rounded up to `lane_multiple` (128 by default; 256 is also
    reasonable on v6e/v7x to match the 256-wide MXU). param_dtype=bf16 gives
    native MXU rate and halves weight DMA; the kernel accumulates in f32.
    """
    w = jnp.asarray(weight).T                              # (Cin, Cout)
    b = jnp.asarray(bias).reshape(1, -1).astype(jnp.float32)
    cout = w.shape[1]
    cout_p = _round_up(cout, lane_multiple)
    if cout_p != cout:
        w = jnp.pad(w, ((0, 0), (0, cout_p - cout)))
        b = jnp.pad(b, ((0, 0), (0, cout_p - cout)))
    if param_dtype is not None:
        w = w.astype(param_dtype)
    return w, b, cout


def _time_embedder_kernel(t_ref, w_ref, b_ref, o_ref):
    # SiLU in f32 on VPU + EUP (v5e has no bf16 VPU); matmul on the MXU in the
    # weight's native dtype (bf16-native on v6e/v7x) with f32 accumulation.
    x = t_ref[...].astype(jnp.float32)
    silu = x * jax.nn.sigmoid(x)                           # SiLU(x) = x*sigmoid(x)
    acc = jnp.dot(silu.astype(w_ref.dtype), w_ref[...],
                  preferred_element_type=jnp.float32)
    acc = acc + b_ref[...].astype(jnp.float32)             # (1, tile_n) broadcast
    o_ref[...] = acc.astype(o_ref.dtype)


def time_embedder(t, w_p, b_p, out_channels, *, block_m=None, tile_n=None,
                  small_batch_threshold=256):
    """SiLU(t) @ w_p + b_p, with w_p/b_p from prepare_time_embedder_params.

    t: (B, Cin).  Returns (B, out_channels) in t.dtype.
    Callers that can consume the lane-padded (B, cout_p) slab directly should
    pass out_channels == w_p.shape[1] to skip the final column-slice copy.
    """
    B, Cin = t.shape
    cout_p = w_p.shape[1]
    out_dtype = t.dtype

    cost = pl.CostEstimate(
        flops=2 * B * Cin * cout_p,
        transcendentals=B * Cin,
        bytes_accessed=(t.size * t.dtype.itemsize
                        + w_p.size * w_p.dtype.itemsize
                        + b_p.size * b_p.dtype.itemsize
                        + B * cout_p * jnp.dtype(out_dtype).itemsize),
    )

    if block_m is None and B <= small_batch_threshold:
        # Tiny batch: single block, no grid machinery (fixed-overhead bound).
        out_p = pl.pallas_call(
            _time_embedder_kernel,
            out_shape=jax.ShapeDtypeStruct((B, cout_p), out_dtype),
            in_specs=[pl.BlockSpec(memory_space=pltpu.MemorySpace.VMEM)] * 3,
            out_specs=pl.BlockSpec(memory_space=pltpu.MemorySpace.VMEM),
            cost_estimate=cost,
        )(t, w_p, b_p)
    else:
        if block_m is None:
            # Amortize per-step overhead but keep >= 2 row tiles so v7x's two
            # TensorCores both get work under dimension_semantics="parallel".
            block_m = min(1024, _round_up(pl.cdiv(B, 2), _SUBLANE))
        block_m = max(_SUBLANE, _round_up(min(block_m, B), _SUBLANE))

        if tile_n is None:
            # Keep the whole weight resident unless it is genuinely large;
            # then tile Cout to respect v7x's smaller scoped VMEM.
            tile_n = cout_p
            if Cin * cout_p * w_p.dtype.itemsize > (8 << 20):
                tile_n = 8 * _LANE
        tile_n = min(_round_up(tile_n, _LANE), cout_p)

        grid_m = pl.cdiv(B, block_m)        # ragged last row tile clipped by Pallas
        grid_n = pl.cdiv(cout_p, tile_n)

        vmem_need = (2 * block_m * Cin * t.dtype.itemsize
                     + 2 * block_m * tile_n * jnp.dtype(out_dtype).itemsize
                     + 2 * Cin * tile_n * w_p.dtype.itemsize
                     + 2 * tile_n * b_p.dtype.itemsize)
        cp_kwargs = dict(dimension_semantics=("parallel", "parallel"))
        if vmem_need > (30 << 20):
            cp_kwargs["vmem_limit_bytes"] = min(int(vmem_need * 5 // 4), 100 << 20)

        out_p = pl.pallas_call(
            _time_embedder_kernel,
            out_shape=jax.ShapeDtypeStruct((B, cout_p), out_dtype),
            grid=(grid_m, grid_n),
            in_specs=[
                # n is the minor grid axis, so the t block index is unchanged
                # across it and its DMA is skipped on repeated steps.
                pl.BlockSpec((block_m, Cin), lambda i, j: (i, 0)),
                pl.BlockSpec((Cin, tile_n), lambda i, j: (0, j)),
                pl.BlockSpec((1, tile_n), lambda i, j: (0, j)),
            ],
            out_specs=pl.BlockSpec((block_m, tile_n), lambda i, j: (i, j)),
            compiler_params=pltpu.CompilerParams(**cp_kwargs),
            cost_estimate=cost,
        )(t, w_p, b_p)

    if out_channels != cout_p:
        # Layout plumbing only; avoidable by consuming the padded slab downstream.
        out_p = out_p[:, :out_channels]
    return out_p


def _ref(t, w_pt, b_pt):
    x = t.astype(jnp.float32)
    silu = x * jax.nn.sigmoid(x)
    out = silu @ w_pt.astype(jnp.float32).T + b_pt.astype(jnp.float32)
    return out.astype(t.dtype)


if __name__ == "__main__":
    key = jax.random.PRNGKey(0)
    k_t, k_w, k_b, k_t2, k_w3, k_b3 = jax.random.split(key, 6)

    batch, cin, cout = 8, 32, 64

    # PyTorch nn.Linear layout: weight (Cout, Cin), bias (Cout,).
    w_pt = jax.random.normal(k_w, (cout, cin), dtype=jnp.float32) * 0.02
    b_pt = jax.random.normal(k_b, (cout,), dtype=jnp.float32) * 0.02
    t = jax.random.normal(k_t, (batch, cin), dtype=jnp.float32)
    n = None  # unused by TimeEmbedder.forward

    # One-time param prep (transpose + lane pad) -- not paid per forward call.
    w_p, b_p, cout_real = prepare_time_embedder_params(w_pt, b_pt)

    # 1) Tiny-batch single-block path.
    out = time_embedder(t, w_p, b_p, cout_real)
    jax.block_until_ready(out)
    assert out.shape == (batch, cout)
    assert jnp.allclose(out, _ref(t, w_pt, b_pt), atol=1e-5, rtol=1e-5)

    # 2) Row-tiled grid path with a ragged last row tile (B=20, block_m=8).
    t2 = jax.random.normal(k_t2, (20, cin), dtype=jnp.float32)
    out2 = time_embedder(t2, w_p, b_p, cout_real, block_m=8)
    jax.block_until_ready(out2)
    assert out2.shape == (20, cout)
    assert jnp.allclose(out2, _ref(t2, w_pt, b_pt), atol=1e-5, rtol=1e-5)

    # 3) Cout-tiled grid path (Cout=192 pads to 256; tile_n=128 -> 2 N tiles).
    cout3 = 192
    w3_pt = jax.random.normal(k_w3, (cout3, cin), dtype=jnp.float32) * 0.02
    b3_pt = jax.random.normal(k_b3, (cout3,), dtype=jnp.float32) * 0.02
    w3_p, b3_p, _ = prepare_time_embedder_params(w3_pt, b3_pt)
    out3 = time_embedder(t2, w3_p, b3_p, cout3, block_m=8, tile_n=128)
    jax.block_until_ready(out3)
    assert out3.shape == (20, cout3)
    assert jnp.allclose(out3, _ref(t2, w3_pt, b3_pt), atol=1e-5, rtol=1e-5)

    # 4) bf16 weights (caller-side dtype change; f32 SiLU + f32 MXU accumulate).
    wbf_p, bbf_p, _ = prepare_time_embedder_params(w_pt, b_pt,
                                                   param_dtype=jnp.bfloat16)
    out4 = time_embedder(t, wbf_p, bbf_p, cout_real)
    jax.block_until_ready(out4)
    assert out4.shape == (batch, cout)
    assert jnp.allclose(out4, _ref(t, w_pt, b_pt), atol=3e-2, rtol=3e-2)

    print("KERNEL_OK")
</pallas_src>

<mosaic_0001>
module attributes {stable_mosaic.version = 11 : i64} {
  func.func @_time_embedder_kernel(%arg0: memref<8x32xf32, #tpu.memory_space<vmem>>, %arg1: memref<32x128xf32, #tpu.memory_space<vmem>>, %arg2: memref<1x128xf32, #tpu.memory_space<vmem>>, %arg3: memref<8x128xf32, #tpu.memory_space<vmem>>) attributes {dimension_semantics = [], scalar_prefetch = 0 : i64, scratch_operands = 0 : i64, tpu.core_type = #tpu.core_type<tc>} {
    %c0 = arith.constant 0 : index
    %c0_0 = arith.constant 0 : index
    %0 = vector.load %arg0[%c0, %c0_0] : memref<8x32xf32, #tpu.memory_space<vmem>>, vector<8x32xf32>
    %1 = arith.negf %0 : vector<8x32xf32>
    %2 = math.exp %1 : vector<8x32xf32>
    %cst = arith.constant 1.000000e+00 : f32
    %3 = vector.broadcast %cst : f32 to vector<8x32xf32>
    %4 = arith.addf %3, %2 : vector<8x32xf32>
    %5 = arith.divf %3, %4 : vector<8x32xf32>
    %6 = arith.mulf %0, %5 : vector<8x32xf32>
    %c0_1 = arith.constant 0 : index
    %c0_2 = arith.constant 0 : index
    %7 = vector.load %arg1[%c0_1, %c0_2] : memref<32x128xf32, #tpu.memory_space<vmem>>, vector<32x128xf32>
    %cst_3 = arith.constant dense<0.000000e+00> : vector<8x128xf32>
    %8 = tpu.matmul %6, %7, %cst_3 {dimension_numbers = #tpu.dot_dimension_numbers<[1], [0], [0], [1], [0, 0, 1, 1], [], []>} : vector<8x32xf32>, vector<32x128xf32>, vector<8x128xf32> -> vector<8x128xf32>
    %c0_4 = arith.constant 0 : index
    %c0_5 = arith.constant 0 : index
    %9 = vector.load %arg2[%c0_4, %c0_5] : memref<1x128xf32, #tpu.memory_space<vmem>>, vector<1x128xf32>
    %10 = vector.broadcast %9 : vector<1x128xf32> to vector<8x128xf32>
    %11 = arith.addf %8, %10 : vector<8x128xf32>
    %c0_6 = arith.constant 0 : index
    %c0_7 = arith.constant 0 : index
    %12 = vector.load %arg3[%c0_6, %c0_7] : memref<8x128xf32, #tpu.memory_space<vmem>>, vector<8x128xf32>
    tpu.vector_store %arg3[%c0_6, %c0_7], %11 {strides = array<i32>} : memref<8x128xf32, #tpu.memory_space<vmem>>, vector<8x128xf32>,
    return
  }
}

</mosaic_0001>

<bundles_post_ra>
// kernel: tpu_custom_call.1
= control target key start
LH: loop header
LB: loop body
LE: loop exit
PB: predicated region body
PF: predicated region fallthrough
CT: control target
= control target key end

     0   :  { %8 = vsyncpa [#allocation3], 0  ;;  %s334_s0 = inlined_call_operand.hbm [shape: f32[8,32], index: 0, kind: input, shape index: {}]   ;;  %s335_s1 = inlined_call_operand.hbm [shape: f32[32,128], index: 1, kind: input, shape index: {}]   ;;  %s336_s2 = inlined_call_operand.vmem [shape: f32[1,128], index: 2, kind: input, shape index: {}]   ;;  %s337_s3 = inlined_call_operand.hbm [shape: f32[8,128], index: 3, kind: output, shape index: {}]  }
   0x1   :  { %9 = vsyncpa [#allocation6], 0 }
   0x2   :  { %10 = vsyncpa [#allocation4], 0  ;;  %s260_s12 = smov [#allocation2]   ;;  %s261_s14 = smov [#allocation5]  }
   0x3   :  { %s17_s13 = sshll.u32 %s260_s12, 4  ;;  %s26_s15 = sshll.u32 %s261_s14, 4  ;;  %s18_s13 = int_to_ptr.vmem [resolvable:$true] %s17_s13  ;;  %s288_s15 = int_to_ptr.vmem [resolvable:$true] %s26_s15 }
   0x4   :  { %s188_s18 = scalar_lea.hbm %s334_s0, 128 }
   0x5   :  { %p189_p0 = scmp.ne.s32.totalorder %s334_s0, %s188_s18  ;;  %p192_p1 = scmp.lt.u32.totalorder %s188_s18, %s334_s0 }
   0x7   :  { %p194_p2 = pnand %p192_p1, %p189_p0 }
   0x9   :  { %197 = shalt.err (!%p194_p2)
}
   0xa   :  { %s198_s23 = scalar_lea.vmem %s18_s13, 128  ;;  %p203_p4 = scmp.lt.s32.totalorder %s18_s13, %s18_s13 }
   0xb   :  { %p199_p3 = scmp.ne.s32.totalorder %s18_s13, %s198_s23  ;;  %p204_p5 = scmp.lt.s32.totalorder %s198_s23, %s198_s23 }
   0xd   :  { %p205_p6 = por %p204_p5, %p203_p4 }
   0xf   :  { %p206_p7 = pnand %p205_p6, %p199_p3 }
  0x11   :  { %209 = shalt.err (!%p206_p7)
}
  0x12   :  { %20 = dma.hbm_to_vmem [thread:$0]  %s334_s0, 128, %s18_s13, [#allocation3]  }
  0x13   :  { %s210_s28 = scalar_lea.hbm %s335_s1, 512 }
  0x14   :  { %p211_p8 = scmp.ne.s32.totalorder %s335_s1, %s210_s28  ;;  %p214_p9 = scmp.lt.u32.totalorder %s210_s28, %s335_s1 }
  0x16   :  { %p216_p10 = pnand %p214_p9, %p211_p8 }
  0x18   :  { %219 = shalt.err (!%p216_p10)
}
  0x19   :  { %s220_s6 = scalar_lea.vmem %s288_s15, 512  ;;  %p225_p12 = scmp.lt.s32.totalorder %s288_s15, %s288_s15 }
  0x1a   :  { %p221_p11 = scmp.ne.s32.totalorder %s288_s15, %s220_s6  ;;  %p226_p13 = scmp.lt.s32.totalorder %s220_s6, %s220_s6 }
  0x1c   :  { %p227_p0 = por %p226_p13, %p225_p12 }
  0x1e   :  { %p228_p1 = pnand %p227_p0, %p221_p11 }
  0x20   :  { %231 = shalt.err (!%p228_p1)
}
  0x21   :  { %s262_s0 = smov 128   ;;  %s263_s7 = smov 8  }
  0x22   :  { %32 = dma.hbm_to_vmem [thread:$0]  %s335_s1, 512, %s288_s15, [#allocation6], %s262_s0, %s262_s0, %s263_s7  }
  0x23   :  { %254 = dma.done.wait [#allocation3], 128  }
  0x24   :  { %255 = vsyncadd [#allocation3], 4294967168 }
  0x25   :  { %256 = dma.done.wait [#allocation6], 512  }
  0x26   :  { %257 = vsyncadd [#allocation6], 4294966784  ;;  %v264_v0 = vmov 0.0|0.0   ;;  %vm265_vm0 = vmmov 0   ;;  %v266_v1 = vmov 0.0   ;;  %v49_v2 = vld [vmem:[#allocation5] sm:$0xff] }
  0x27   :  { %170 = vmatprep.subr.bf16.mxu0 %v264_v0  ;;  %167 = vmatprep.mubr.msk.f32.mxu0 %vm265_vm0, %v266_v1  ;;  %v50_v3 = vld [vmem:[#allocation5 + $0x8] sm:$0xff]  ;;  %v51_v4 = vld [vmem:[#allocation5 + $0x10] sm:$0xff]  ;;  %v52_v6 = vld [vmem:[#allocation5 + $0x18] sm:$0xff]  ;;  %vm60_vm1 = vcmask 261120   ;;  %s267_s11 = smov [#allocation7]  }
  0x28   :  { %v171_v5 = vpack.c.bf16 %v50_v3, %v49_v2  ;;  %v41_v7 = vld [vmem:[#allocation2] sm:$0xff]  ;;  %v174_v9 = vpack.c.bf16 %v52_v6, %v51_v4  ;;  %s141_s12 = sshll.u32 %s267_s11, 4  ;;  %s142_s12 = int_to_ptr.vmem [resolvable:$true] %s141_s12 }
  0x29   :  { %v151_v8 = vmul.f32 -1.442695, %v41_v7  ;;  %v152_v14 = vld [vmem:[%s336_s2] ss:$0 sm:$0xff]  ;;  %s232_s13 = scalar_lea.vmem %s142_s12, 128  ;;  %p237_p3 = scmp.lt.s32.totalorder %s142_s12, %s142_s12 }
  0x2a   :  { %172 = vmatpush3.bf16.msra.mxu0 %v171_v5  ;;  %p233_p2 = scmp.ne.s32.totalorder %s142_s12, %s232_s13  ;;  %p238_p4 = scmp.lt.s32.totalorder %s232_s13, %s232_s13 }
  0x2b   :  { %173 = vmatprep.subr.bf16.mxu0 %v264_v0  ;;  %184 = vpow2.f32 %v151_v8 }
  0x2c   :  { %p239_p5 = por %p238_p4, %p237_p3 }
  0x2e   :  { %175 = vmatpush3.bf16.msra.mxu0 %v174_v9  ;;  %p240_p6 = pnand %p239_p5, %p233_p2 }
  0x35   :  { %v185_v10 = vpop.eup %184 }
  0x36   :  { %v45_v11 = vadd.f32 1.0, %v185_v10 }
  0x38   :  { %186 = vrcp.f32 %v45_v11 }
  0x42   :  { %v187_v12 = vpop.eup %186 }
  0x43   :  { %v48_v13 = vmul.f32 %v187_v12, %v41_v7 }
  0x45   :  { %168 = vmatmul.mubr.msk.f32.vlgmr.msra.gmra.mrb[0].mxu0 %vm60_vm1, %v48_v13 }
 0x118   :  { %v130_v15 = vpop.f32.mrb[0].mxu0 }
 0x119   :  { %v131_v16 = vadd.f32 %v152_v14, %v130_v15  ;;  %v169_v17 = vpop.f32.mrb[1].mxu0 }
 0x11b   :  { %134 = vst [vmem:[#allocation7] sm:$0xff] %v131_v16 }
 0x11c   :  { %243 = shalt.err (!%p240_p6)
}
 0x11d   :  { %s244_s16 = scalar_lea.hbm %s337_s3, 128 }
 0x11e   :  { %p245_p7 = scmp.ne.s32.totalorder %s337_s3, %s244_s16  ;;  %p248_p8 = scmp.lt.u32.totalorder %s244_s16, %s337_s3 }
 0x120   :  { %p250_p9 = pnand %p248_p8, %p245_p7 }
 0x122   :  { %253 = shalt.err (!%p250_p9)
}
 0x123   :  { %144 = dma.vmem_to_hbm [thread:$0]  %s142_s12, 128, %s337_s3, [#allocation4]  }
 0x124   :  { %258 = dma.done.wait [#allocation4], 128  }
 0x125   :  { %259 = vsyncadd [#allocation4], 4294967168 }
 0x126   :  { %148 = vsyncpa [#allocation3], 1 }
 0x127   :  { %149 = vsyncpa [#allocation6], 1 }
 0x128   :  { %150 = vsyncpa [#allocation4], 1 }

</bundles_post_ra>
